<compile_context>
chip_gen: v6e
topology: v6e:2x2x1
jax: 0.10.0
libtpu: 0.0.40
codegen_flags: <defaults>
</compile_context>

<pallas_src>
import functools
import math

import jax
import jax.numpy as jnp
from jax.experimental import pallas as pl
from jax.experimental.pallas import tpu as pltpu


def _round_up(x, m):
    return ((x + m - 1) // m) * m


def _choose_row_tile(rows, max_rows, min_steps=4):
    """Pick a row tile (multiple of 8, <= max_rows) aiming for >= min_steps
    grid steps when the batch allows.  >= 2 steps lets the "parallel" axis
    split across v7x's two TensorCores and restores DMA/compute pipelining on
    every generation.  `rows` must already be a multiple of 8."""
    want = max(8, _round_up(pl.cdiv(rows, min_steps), 8))
    return max(8, min(rows, max_rows, want))


# ---------------------------------------------------------------------------
# Lane-dense (packed) path: d <= 128 and 128 % d == 0.
# ---------------------------------------------------------------------------
def _diag_gaussian_packed_kernel(eps_ref, loc_ref, ls_ref, sel_ref,
                                 z_ref, logp_ref, *, d, P):
    eps = eps_ref[...]          # (TN, 128) f32, P samples packed per row
    loc = loc_ref[...]          # (1, 128)  f32, loc tiled P times across lanes
    ls = ls_ref[...]            # (1, 128)  f32, log_scale tiled P times

    # z = loc + exp(log_scale) * eps  (EUP exp on (1,128) + VPU elementwise).
    z_ref[...] = (loc + jnp.exp(ls) * eps).astype(z_ref.dtype)

    # log_p = const - sum(log_scale) - 0.5 * sum(eps^2 over feature axis).
    # sum(log_scale) folded into the constant (no (N,d) broadcast of log_scale).
    sum_ls = jnp.sum(ls) * jnp.float32(1.0 / P)          # ls holds P copies
    const = jnp.float32(-0.5 * d * math.log(2.0 * math.pi)) - sum_ls
    # Segment sum over each sample's d lanes via one-hot matmul on the MXU
    # (f32 x f32 with f32 accumulation -- do not downcast to bf16).
    seg = jnp.dot(eps * eps, sel_ref[...],
                  preferred_element_type=jnp.float32)    # (TN, P)
    # TODO(synk): on v7x, flushing log_p through a lane-dense VMEM scratch
    # slab would halve vst-slot ops vs this (TN, P) masked store; left as-is
    # since HBM bandwidth binds first on v5e/v6e.
    logp_ref[...] = (const - 0.5 * seg).astype(logp_ref.dtype)


def _forward_packed(eps, loc, log_scale, P):
    n, d = eps.shape
    L = P * d                                  # == 128 lanes
    pn0 = pl.cdiv(n, P)                        # packed rows actually needed

    # tn=4096 -> 2 MiB eps block + 2 MiB z block; double-buffered footprint
    # ~8.5 MiB, under the 16 MiB v5e scoped-VMEM default (and well under
    # v6e/v7x's 32 MiB default).  _choose_row_tile caps it so the grid keeps
    # >= ~4 steps for v7x megacore / pipelining when the batch allows.
    tn = _choose_row_tile(_round_up(pn0, 8), max_rows=4096, min_steps=4)
    pn = _round_up(pn0, tn)                    # tn divides pn: no ragged block
    n_pad = pn * P

    # Pad rows with zeros (padded samples yield z=loc and finite log_p; both
    # are sliced off below), then row-major (n_pad, d) -> (pn, 128) relayout.
    eps_w = eps if n_pad == n else jnp.pad(eps, ((0, n_pad - n), (0, 0)))
    eps_p = eps_w.reshape(pn, L)
    loc_p = jnp.tile(loc, (1, P))
    ls_p = jnp.tile(log_scale, (1, P))
    # Block-diagonal selector: sel[j, k] = 1 iff lane j belongs to sub-sample k.
    sel = (jnp.arange(L)[:, None] // d
           == jnp.arange(P)[None, :]).astype(jnp.float32)   # (128, P)

    grid = (pn // tn,)
    z_p, logp_p = pl.pallas_call(
        functools.partial(_diag_gaussian_packed_kernel, d=d, P=P),
        out_shape=(
            jax.ShapeDtypeStruct((pn, L), eps.dtype),
            jax.ShapeDtypeStruct((pn, P), jnp.float32),
        ),
        grid=grid,
        in_specs=[
            pl.BlockSpec((tn, L), lambda i: (i, 0)),   # eps (row-tiled)
            pl.BlockSpec((1, L), lambda i: (0, 0)),    # loc (resident)
            pl.BlockSpec((1, L), lambda i: (0, 0)),    # log_scale (resident)
            pl.BlockSpec((L, P), lambda i: (0, 0)),    # selector (resident)
        ],
        out_specs=(
            pl.BlockSpec((tn, L), lambda i: (i, 0)),   # z (lane-dense)
            pl.BlockSpec((tn, P), lambda i: (i, 0)),   # log_p
        ),
        compiler_params=pltpu.CompilerParams(
            dimension_semantics=("parallel",)),
    )(eps_p, loc_p, ls_p, sel)

    return z_p.reshape(n_pad, d)[:n], logp_p.reshape(n_pad)[:n]


# ---------------------------------------------------------------------------
# General (unpacked) fallback path: any d (realistically d >= 128 or d not
# dividing 128); rows padded to a multiple of the chosen tile.
# ---------------------------------------------------------------------------
def _diag_gaussian_kernel(eps_ref, loc_ref, ls_ref, ones_ref,
                          z_ref, logp_ref, *, d, use_mxu):
    eps = eps_ref[...]          # (TN, d) f32
    ls = ls_ref[...]            # (1, d)  f32
    z_ref[...] = (loc_ref[...] + jnp.exp(ls) * eps).astype(z_ref.dtype)
    # Fold sum(log_scale) into the constant; only eps^2 touches the (TN,d) path.
    const = jnp.float32(-0.5 * d * math.log(2.0 * math.pi)) - jnp.sum(ls)
    sq = eps * eps
    if use_mxu:
        # Route the row reduction to the (idle) MXU: (TN,d)@(d,128) all-ones,
        # then take lane 0.  Avoids d/128 XLU ops per row group.
        rowsum = jnp.dot(sq, ones_ref[...],
                         preferred_element_type=jnp.float32)[:, :1]
    else:
        rowsum = jnp.sum(sq, axis=1, keepdims=True)
    logp_ref[...] = (const - 0.5 * rowsum).astype(logp_ref.dtype)


def _forward_unpacked(eps, loc, log_scale):
    n, d = eps.shape
    use_mxu = d >= 128

    # ~3 MiB f32 blocks (768K elements): pipelined eps+z footprint ~12 MiB.
    # vmem_limit_bytes=32 MiB gives margin on v5e (16 MiB scoped default) and
    # is safe on every generation (v7x physical VMEM is 64 MiB per TC).
    max_rows = min(8192, max(8, (((768 * 1024) // max(d, 1)) // 8) * 8))
    rows0 = _round_up(max(n, 1), 8)
    tn = _choose_row_tile(rows0, max_rows=max_rows, min_steps=4)
    n_pad = _round_up(rows0, tn)               # tn divides n_pad
    eps_w = eps if n_pad == n else jnp.pad(eps, ((0, n_pad - n), (0, 0)))
    ones = jnp.ones((d, 128), jnp.float32)

    grid = (n_pad // tn,)
    z, logp = pl.pallas_call(
        functools.partial(_diag_gaussian_kernel, d=d, use_mxu=use_mxu),
        out_shape=(
            jax.ShapeDtypeStruct((n_pad, d), eps.dtype),
            jax.ShapeDtypeStruct((n_pad, 1), jnp.float32),
        ),
        grid=grid,
        in_specs=[
            pl.BlockSpec((tn, d), lambda i: (i, 0)),   # eps (row-tiled)
            pl.BlockSpec((1, d), lambda i: (0, 0)),    # loc (resident)
            pl.BlockSpec((1, d), lambda i: (0, 0)),    # log_scale (resident)
            pl.BlockSpec((d, 128), lambda i: (0, 0)),  # ones (resident)
        ],
        out_specs=(
            pl.BlockSpec((tn, d), lambda i: (i, 0)),
            pl.BlockSpec((tn, 1), lambda i: (i, 0)),
        ),
        compiler_params=pltpu.CompilerParams(
            dimension_semantics=("parallel",),
            vmem_limit_bytes=32 * 1024 * 1024),
    )(eps_w, loc, log_scale, ones)

    # Padded rows produce values beyond n; keep this slice.
    return z[:n], logp[:n, 0]


def diag_gaussian_forward(eps, loc, log_scale):
    """Pallas implementation of DiagGaussian.forward given pre-drawn eps.

    eps: (n, d) f32, loc/log_scale: (1, d) f32.
    Returns (z: (n, d), log_p: (n,)).
    """
    n, d = eps.shape
    if n > 0 and 0 < d <= 128 and 128 % d == 0:
        # Lane-dense fast path for any n (rows padded to a multiple of 8*P).
        return _forward_packed(eps, loc, log_scale, 128 // d)
    return _forward_unpacked(eps, loc, log_scale)


def diag_gaussian_forward_ref(eps, loc, log_scale):
    """Pure-JAX reference mirroring the PyTorch module."""
    d = eps.shape[1]
    z = loc + jnp.exp(log_scale) * eps
    log_p = -0.5 * d * math.log(2.0 * math.pi) - jnp.sum(
        log_scale + 0.5 * eps**2, axis=1
    )
    return z, log_p


if __name__ == "__main__":
    key = jax.random.PRNGKey(0)
    keys = jax.random.split(key, 12)

    def run_case(k_eps, k_loc, k_ls, n, d):
        # Deterministic "parameters" (the module initializes zeros; use small
        # non-zero values so broadcasting is actually exercised).
        loc = 0.1 * jax.random.normal(k_loc, (1, d), dtype=jnp.float32)
        log_scale = 0.05 * jax.random.normal(k_ls, (1, d), dtype=jnp.float32)
        # eps ~ N(0,1) drawn in the wrapper (glue), consumed by the kernel.
        # TODO(synk): in-kernel sampling via pltpu.prng_* would remove the eps
        # HBM read (~2x on this mem-bound kernel) but would not bit-match
        # torch.randn, so eps stays a wrapper input.
        eps = jax.random.normal(k_eps, (n, d), dtype=jnp.float32)

        z, log_p = diag_gaussian_forward(eps, loc, log_scale)
        jax.block_until_ready((z, log_p))
        z_ref, log_p_ref = diag_gaussian_forward_ref(eps, loc, log_scale)
        assert z.shape == (n, d) and log_p.shape == (n,)
        assert jnp.allclose(z, z_ref, atol=1e-5, rtol=1e-5)
        assert jnp.allclose(log_p, log_p_ref, atol=1e-4, rtol=1e-5)

    # Packed / lane-dense path, n NOT a multiple of 8*P (exercises widened
    # admission via row padding).
    run_case(keys[0], keys[1], keys[2], n=1000, d=32)
    # Packed path, exact fit, multi-step grid.
    run_case(keys[3], keys[4], keys[5], n=1024, d=64)
    # Unpacked path, d >= 128 (MXU row reduction) with row padding.
    run_case(keys[6], keys[7], keys[8], n=100, d=192)
    # Unpacked path, small awkward d (VPU/XLU reduction branch).
    run_case(keys[9], keys[10], keys[11], n=10, d=7)

    print("KERNEL_OK")
</pallas_src>

<mosaic_0001>
module attributes {stable_mosaic.version = 11 : i64} {
  func.func @_diag_gaussian_packed_kernel(%arg0: i32, %arg1: memref<64x128xf32, #tpu.memory_space<vmem>>, %arg2: memref<1x128xf32, #tpu.memory_space<vmem>>, %arg3: memref<1x128xf32, #tpu.memory_space<vmem>>, %arg4: memref<128x4xf32, #tpu.memory_space<vmem>>, %arg5: memref<64x128xf32, #tpu.memory_space<vmem>>, %arg6: memref<64x4xf32, #tpu.memory_space<vmem>>) attributes {dimension_semantics = [#tpu.dimension_semantics<parallel>], iteration_bounds = array<i64: 4>, scalar_prefetch = 0 : i64, scratch_operands = 0 : i64, tpu.core_type = #tpu.core_type<tc>, window_params = [{transform_indices = @transform_0, window_bounds = array<i64: 64, 128>}, {pipeline_mode = #tpu.pipeline_mode<synchronous>, transform_indices = @transform_1, window_bounds = array<i64: 1, 128>}, {pipeline_mode = #tpu.pipeline_mode<synchronous>, transform_indices = @transform_2, window_bounds = array<i64: 1, 128>}, {pipeline_mode = #tpu.pipeline_mode<synchronous>, transform_indices = @transform_3, window_bounds = array<i64: 128, 4>}, {transform_indices = @transform_4, window_bounds = array<i64: 64, 128>}, {transform_indices = @transform_5, window_bounds = array<i64: 64, 4>}]} {
    %c0 = arith.constant 0 : index
    %c0_0 = arith.constant 0 : index
    %0 = vector.load %arg1[%c0, %c0_0] : memref<64x128xf32, #tpu.memory_space<vmem>>, vector<64x128xf32>
    %c0_1 = arith.constant 0 : index
    %c0_2 = arith.constant 0 : index
    %1 = vector.load %arg2[%c0_1, %c0_2] : memref<1x128xf32, #tpu.memory_space<vmem>>, vector<1x128xf32>
    %c0_3 = arith.constant 0 : index
    %c0_4 = arith.constant 0 : index
    %2 = vector.load %arg3[%c0_3, %c0_4] : memref<1x128xf32, #tpu.memory_space<vmem>>, vector<1x128xf32>
    %3 = math.exp %2 : vector<1x128xf32>
    %4 = vector.broadcast %3 : vector<1x128xf32> to vector<64x128xf32>
    %5 = arith.mulf %4, %0 : vector<64x128xf32>
    %6 = vector.broadcast %1 : vector<1x128xf32> to vector<64x128xf32>
    %7 = arith.addf %6, %5 : vector<64x128xf32>
    %c0_5 = arith.constant 0 : index
    %c0_6 = arith.constant 0 : index
    %8 = vector.load %arg5[%c0_5, %c0_6] : memref<64x128xf32, #tpu.memory_space<vmem>>, vector<64x128xf32>
    tpu.vector_store %arg5[%c0_5, %c0_6], %7 {strides = array<i32>} : memref<64x128xf32, #tpu.memory_space<vmem>>, vector<64x128xf32>,
    %9 = vector.shape_cast %2 : vector<1x128xf32> to vector<1x1x128xf32>
    %cst = arith.constant dense<0.000000e+00> : vector<1xf32>
    %10 = vector.multi_reduction <add>, %9, %cst [1, 2] : vector<1x1x128xf32> to vector<1xf32>
    %11 = vector.shape_cast %10 : vector<1xf32> to vector<1x1x1xf32>
    %12 = vector.extract %11[0, 0, 0] : f32 from vector<1x1x1xf32>
    %cst_7 = arith.constant 2.500000e-01 : f32
    %13 = arith.mulf %12, %cst_7 : f32
    %cst_8 = arith.constant -29.4060326 : f32
    %14 = arith.subf %cst_8, %13 : f32
    %15 = arith.mulf %0, %0 : vector<64x128xf32>
    %c0_9 = arith.constant 0 : index
    %c0_10 = arith.constant 0 : index
    %16 = vector.load %arg4[%c0_9, %c0_10] : memref<128x4xf32, #tpu.memory_space<vmem>>, vector<128x4xf32>
    %cst_11 = arith.constant dense<0.000000e+00> : vector<64x4xf32>
    %17 = tpu.matmul %15, %16, %cst_11 {dimension_numbers = #tpu.dot_dimension_numbers<[1], [0], [0], [1], [0, 0, 1, 1], [], []>} : vector<64x128xf32>, vector<128x4xf32>, vector<64x4xf32> -> vector<64x4xf32>
    %cst_12 = arith.constant 5.000000e-01 : f32
    %18 = vector.broadcast %cst_12 : f32 to vector<64x4xf32>
    %19 = arith.mulf %18, %17 : vector<64x4xf32>
    %20 = vector.broadcast %14 : f32 to vector<64x4xf32>
    %21 = arith.subf %20, %19 : vector<64x4xf32>
    %c0_13 = arith.constant 0 : index
    %c0_14 = arith.constant 0 : index
    %22 = vector.load %arg6[%c0_13, %c0_14] : memref<64x4xf32, #tpu.memory_space<vmem>>, vector<64x4xf32>
    tpu.vector_store %arg6[%c0_13, %c0_14], %21 {strides = array<i32>} : memref<64x4xf32, #tpu.memory_space<vmem>>, vector<64x4xf32>,
    return
  }
  func.func @transform_0(%arg0: i32) -> (i32, i32) {
    %c0_i32 = arith.constant 0 : i32
    %c0_i32_0 = arith.constant 0 : i32
    return %arg0, %c0_i32 : i32, i32
  }
  func.func @transform_1(%arg0: i32) -> (i32, i32) {
    %c0_i32 = arith.constant 0 : i32
    %c0_i32_0 = arith.constant 0 : i32
    %c0_i32_1 = arith.constant 0 : i32
    return %c0_i32, %c0_i32_0 : i32, i32
  }
  func.func @transform_2(%arg0: i32) -> (i32, i32) {
    %c0_i32 = arith.constant 0 : i32
    %c0_i32_0 = arith.constant 0 : i32
    %c0_i32_1 = arith.constant 0 : i32
    return %c0_i32, %c0_i32_0 : i32, i32
  }
  func.func @transform_3(%arg0: i32) -> (i32, i32) {
    %c0_i32 = arith.constant 0 : i32
    %c0_i32_0 = arith.constant 0 : i32
    %c0_i32_1 = arith.constant 0 : i32
    return %c0_i32, %c0_i32_0 : i32, i32
  }
  func.func @transform_4(%arg0: i32) -> (i32, i32) {
    %c0_i32 = arith.constant 0 : i32
    %c0_i32_0 = arith.constant 0 : i32
    return %arg0, %c0_i32 : i32, i32
  }
  func.func @transform_5(%arg0: i32) -> (i32, i32) {
    %c0_i32 = arith.constant 0 : i32
    %c0_i32_0 = arith.constant 0 : i32
    return %arg0, %c0_i32 : i32, i32
  }
}

</mosaic_0001>

<bundles_post_ra>
// kernel: tpu_custom_call.1
= control target key start
LH: loop header
LB: loop body
LE: loop exit
PB: predicated region body
PF: predicated region fallthrough
CT: control target
= control target key end

     0   :  { %11 = vsyncpa [#allocation3], 0  ;;  %s1142_s0 = inlined_call_operand.hbm [shape: f32[256,128], index: 0, kind: input, shape index: {}]   ;;  %s1143_s1 = inlined_call_operand.vmem [shape: f32[1,128], index: 1, kind: input, shape index: {}]   ;;  %s1144_s2 = inlined_call_operand.vmem [shape: f32[1,128], index: 2, kind: input, shape index: {}]   ;;  %s1145_s3 = inlined_call_operand.vmem [shape: f32[128,4], index: 3, kind: input, shape index: {}]   ;;  %s1146_s4 = inlined_call_operand.hbm [shape: f32[256,128], index: 4, kind: output, shape index: {0}]   ;;  %s1147_s5 = inlined_call_operand.vmem [shape: f32[256,4], index: 5, kind: output, shape index: {1}]  }
   0x1   :  { %13 = vsyncpa [#allocation3 + $0x1], 0 }
   0x2   :  { %14 = vsyncpa [#allocation4], 0 }
   0x3   :  { %16 = vsyncpa [#allocation4 + $0x1], 0  ;;  %s899_s18 = smov 0   ;;  %s901_s19 = smov 0  }
   0x4   :  { %s903_s20 = smov 0   ;;  %s905_s21 = smov 0  }
   0x5 LB: > { %s920_s22 = sadd.s32 4294967295, %s861_s21   ;;  %s596_s23 = sadd.s32 4294967294, %s861_s21   ;;  %s861_s21 = sphi %s905_s21, %s1161_s21   ;;  %s857_s20 = sphi %s903_s20, %s1160_s20   ;;  %s853_s19 = sphi %s901_s19, %s1159_s19   ;;  %s849_s18 = sphi %s899_s18, %s1158_s18  }
   0x6   : > { %s924_s24 = sadd.s32 1, %s861_s21   ;;  %s29_s25 = sadd.s32 1, %s857_s20 }
   0x7   : > { %s26_s26 = ssub.s32 %s861_s21, %s924_s24  ;;  %p36_p0 = scmp.ne.s32.totalorder %s857_s20, %s853_s19 }
   0x8   : > { %p27_p1 = scmp.eq.s32.totalorder %s26_s26, 0  ;;  %p37_p2 = scmp.eq.s32.totalorder %s861_s21, 0 }
   0x9   : > { %p42_p3 = scmp.ne.s32.totalorder %s853_s19, %s849_s18  ;;  %p43_p4 = scmp.eq.s32.totalorder %s920_s22, 0 }
   0xa   : > { %s936_s27 = scalar_select %p27_p1, %s857_s20, %s29_s25  }
   0xb   : > { %p938_p5 = por %p37_p2, %p36_p0  ;;  %p942_p6 = por %p43_p4, %p42_p3 }
   0xc   : > { %p129_p7 = scmp.eq.s32.totalorder %s920_s22, 3  ;;  %p135_p8 = scmp.eq.s32.totalorder %s596_s23, 3 }
   0xd   : > { %s1151_s29 = scalar_select %p942_p6, 1, 0 }
   0xe   : > { %p729_p9 = scmp.lt.s32.totalorder %s861_s21, 4  ;;  %p948_p10 = por %p129_p7, %p36_p0 }
   0xf   : > { %p952_p11 = por %p135_p8, %p42_p3  ;;  %s190_s7 = sand.u32 1, %s857_s20  }
  0x10   : > { %s1152_s30 = scalar_select %p948_p10, 1, 0 }
  0x11   : > { %s1153_s6 = scalar_select %p952_p11, 1, 0 }
  0x12   : > { %s613_s8 = sshll.u32 %s861_s21, 10  ;;  %s599_s9 = sshll.u32 %s190_s7, 6 }
  0x13   : > { %s961_s12 = scalar_lea.hbm %s1142_s0, %s613_s8  ;;  %s194_s13 = scalar_lea.vmem [#allocation2], %s599_s9 }
  0x14   : > { %s201_s14 = sshll.u32 %s194_s13, 4  ;;  %p965_p12 = pnand %p729_p9, %p938_p5  ;;  %s969_s14 = int_to_ptr.vmem [resolvable:$true] %s201_s14 }
  0x15   : > { %s971_s16 = scalar_lea.sflag [#allocation3], %s190_s7  ;;  %s769_s17 = scalar_lea.hbm %s961_s12, 1024 }
  0x16   : > { %p770_p13 = scmp.ne.s32.totalorder %s961_s12, %s769_s17  ;;  %p771_p0 = pneg %p965_p12 }
  0x17   : > { %s774_s26 = scalar_lea.hbm %s1142_s0, 4096  ;;  %p775_p3 = scmp.lt.s32.totalorder %s961_s12, %s1142_s0 }
  0x18   : > { %p772_p1 = pnand %p771_p0, %p770_p13  ;;  %p776_p4 = scmp.lt.s32.totalorder %s774_s26, %s769_s17 }
  0x1a   : > { %p773_p2 = pneg %p772_p1  ;;  %p777_p5 = por %p776_p4, %p775_p3 }
  0x1c   : > { %p778_p7 = pnand %p777_p5, %p773_p2 }
  0x1e   : > { %781 = shalt.err (!%p778_p7)
}
  0x1f   : > { %s782_s7 = scalar_lea.vmem %s969_s14, 1024  ;;  %s863_s9 = smov [#allocation2]  }
  0x20   : > { %p783_p8 = scmp.ne.s32.totalorder %s969_s14, %s782_s7  ;;  %s787_s10 = sshll.u32 %s863_s9, 4  ;;  %s788_s10 = int_to_ptr.vmem [resolvable:$false] %s787_s10 }
  0x21   : > { %s789_s11 = scalar_lea.vmem %s788_s10, 2048  ;;  %p790_p1 = scmp.lt.s32.totalorder %s969_s14, %s788_s10 }
  0x22   : > { %p785_p9 = pnand %p783_p8, %p771_p0  ;;  %p791_p11 = scmp.lt.s32.totalorder %s789_s11, %s782_s7 }
  0x24   : > { %p786_p13 = pneg %p785_p9  ;;  %p792_p10 = por %p791_p11, %p790_p1 }
  0x26   : > { %p793_p6 = pnand %p792_p10, %p786_p13 }
  0x28   : > { %796 = shalt.err (!%p793_p6)
}
  0x29   : > { %s864_s13 = smov 128   ;;  %s865_s17 = smov 8  }
  0x2a   : > { %724 = dma.hbm_to_vmem [thread:$0]  (!%p965_p12), %s961_s12, 1024, %s969_s14, %s971_s16, %s864_s13, %s864_s13, %s865_s17  }
  0x2b   : > { %p602_p0 = scmp.ge.s32.totalorder %s861_s21, 1  ;;  %p209_p2 = scmp.lt.s32.totalorder %s861_s21, 5 }
  0x2d   : > { %p210_p3 = pnand %p602_p0, %p209_p2 }
  0x2e   : > { %s995_s23 = sand.u32 (!%p210_p3), 1, %s853_s19   ;;  %p1155_p6 = scmp.ne.s32.totalorder (!%p210_p3), %s1151_s29, 0 }
  0x2f   : > { %213 = sbr.rel (%p210_p3) target bundleno = 292 (0x124), region = 36  ;;  %s603_s25 = sshll.u32 (!%p210_p3), %s995_s23, 6 }
  0x30   : > { %s216_s26 = scalar_lea.sflag (!%p210_p3), [#allocation3], %s995_s23  ;;  %s1001_s28 = scalar_lea.vmem (!%p210_p3), [#allocation2], %s603_s25 }
  0x34   : > { %840 = dma.done.wait (%p1155_p6), %s216_s26, 1024  }
  0x35   : > { %842 = vsyncadd (%p1155_p6), %s216_s26, 4294966272  ;;  %v343_v0 = vld [vmem:[%s1145_s3 + $0x78] sm:$0xff]  ;;  %v342_v1 = vld [vmem:[%s1145_s3 + $0x70] sm:$0xff]  ;;  %v272_v8 = vlaneseq  ;;  %vm307_vm0 = vcmask 1040384   ;;  %s1068_s10 = scalar_lea.vmem [#allocation5], %s603_s25  ;;  %s614_s11 = sshll.u32 %s920_s22, 10 }
  0x36   : > { %639 = vmatprep.subr.mxu0 %v343_v0  ;;  %683 = vmatprep.subr.mxu1 %v343_v0  ;;  %v341_v2 = vld [vmem:[%s1145_s3 + $0x68] sm:$0xff]  ;;  %v268_v3 = vld [vmem:[%s1144_s2] sm:$0x1]  ;;  %v339_v6 = vld [vmem:[%s1145_s3 + $0x58] sm:$0xff]  ;;  %s494_s13 = sshll.u32 %s1068_s10, 4  ;;  %s1086_s12 = scalar_lea.hbm %s1146_s4, %s614_s11  ;;  %s1088_s13 = int_to_ptr.vmem [resolvable:$true] %s494_s13 }
  0x37   : > { %640 = vmatpush3.msra.mxu0 %v343_v0  ;;  %699 = vmatpush3.msra.mxu1 %v343_v0  ;;  %v340_v4 = vld [vmem:[%s1145_s3 + $0x60] sm:$0xff]  ;;  %v269_v5 = vmul.f32 1.442695, %v268_v3  ;;  %v338_v7 = vld [vmem:[%s1145_s3 + $0x50] sm:$0xff]  ;;  %v337_v9 = vld [vmem:[%s1145_s3 + $0x48] sm:$0xff]  ;;  %v273_v11 = vshrl.u32 %v272_v8, 7 }
  0x38   : > { %641 = vmatprep.subr.mxu0 %v342_v1  ;;  %684 = vmatprep.subr.mxu1 %v342_v1  ;;  %v336_v10 = vld [vmem:[%s1145_s3 + $0x40] sm:$0xff]  ;;  %v335_v12 = vld [vmem:[%s1145_s3 + $0x38] sm:$0xff]  ;;  %v334_v13 = vld [vmem:[%s1145_s3 + $0x30] sm:$0xff]  ;;  %v308_v18 = vsel %vm307_vm0, %v268_v3, 0.0  ;;  %s476_s14 = scalar_lea.sflag [#allocation4], %s995_s23  ;;  %s797_s15 = scalar_lea.vmem %s1088_s13, 1024 }
  0x39   : > { %642 = vmatpush3.msra.mxu0 %v342_v1  ;;  %700 = vmatpush3.msra.mxu1 %v342_v1  ;;  %767 = vpow2.f32 %v269_v5  ;;  %v274_v14 = vsub.s32 0, %v273_v11  ;;  %v333_v15 = vld [vmem:[%s1145_s3 + $0x28] sm:$0xff]  ;;  %v332_v19 = vld [vmem:[%s1145_s3 + $0x20] sm:$0xff]  ;;  %v331_v20 = vld [vmem:[%s1145_s3 + $0x18] sm:$0xff]  ;;  %p798_p10 = scmp.ne.s32.totalorder %s1088_s13, %s797_s15  ;;  %p1156_p11 = scmp.ne.s32.totalorder %s1152_s30, 0 }
  0x3a   : > { %643 = vmatprep.subr.mxu0 %v341_v2  ;;  %685 = vmatprep.subr.mxu1 %v341_v2  ;;  %v259_v21 = vld [vmem:[%s1001_s28] sm:$0xff]  ;;  %v260_v24 = vld [vmem:[%s1001_s28 + $0x8] sm:$0xff]  ;;  %v261_v29 = vld [vmem:[%s1001_s28 + $0x10] sm:$0xff]  ;;  %s866_s16 = smov [#allocation5]  }
  0x3b   : > { %644 = vmatpush3.msra.mxu0 %v341_v2  ;;  %701 = vmatpush3.msra.mxu1 %v341_v2  ;;  %v607_v22 = vld [vmem:[%s1143_s1] ss:$0 sm:$0xff]  ;;  %v264_v28 = vld [vmem:[%s1001_s28 + $0x28] sm:$0xff]  ;;  %v265_v30 = vld [vmem:[%s1001_s28 + $0x30] sm:$0xff]  ;;  %v320_v49 = vmul.f32 %v259_v21, %v259_v21  ;;  %v321_v51 = vmul.f32 %v260_v24, %v260_v24  ;;  %v322_v53 = vmul.f32 %v261_v29, %v261_v29  ;;  %p799_p12 = pnand %p798_p10, %p1156_p11  ;;  %s801_s8 = sshll.u32 %s866_s16, 4  ;;  %s802_s8 = int_to_ptr.vmem [resolvable:$false] %s801_s8 }
  0x3c   : > { %645 = vmatprep.subr.mxu0 %v340_v4  ;;  %686 = vmatprep.subr.mxu1 %v340_v4  ;;  %v263_v23 = vld [vmem:[%s1001_s28 + $0x20] sm:$0xff]  ;;  %v330_v34 = vld [vmem:[%s1145_s3 + $0x10] sm:$0xff]  ;;  %v262_v41 = vld [vmem:[%s1001_s28 + $0x18] sm:$0xff]  ;;  %v325_v52 = vmul.f32 %v264_v28, %v264_v28  ;;  %v326_v54 = vmul.f32 %v265_v30, %v265_v30  ;;  %s803_s7 = scalar_lea.vmem %s802_s8, 2048  ;;  %p804_p5 = scmp.lt.s32.totalorder %s1088_s13, %s802_s8 }
  0x3d   : > { %646 = vmatpush3.msra.mxu0 %v340_v4  ;;  %702 = vmatpush3.msra.mxu1 %v340_v4  ;;  %v266_v42 = vld [vmem:[%s1001_s28 + $0x38] sm:$0xff]  ;;  %v329_v43 = vld [vmem:[%s1145_s3 + $0x8] sm:$0xff]  ;;  %v328_v46 = vld [vmem:[%s1145_s3] sm:$0xff]  ;;  %v324_v50 = vmul.f32 %v263_v23, %v263_v23  ;;  %v323_v55 = vmul.f32 %v262_v41, %v262_v41  ;;  %p800_p4 = pneg %p799_p12  ;;  %p805_p7 = scmp.lt.s32.totalorder %s803_s7, %s797_s15 }
  0x3e   : > { %647 = vmatprep.subr.mxu0 %v339_v6  ;;  %687 = vmatprep.subr.mxu1 %v339_v6  ;;  %v327_v56 = vmul.f32 %v266_v42, %v266_v42 }
  0x3f   : > { %648 = vmatpush3.msra.mxu0 %v339_v6  ;;  %703 = vmatpush3.msra.mxu1 %v339_v6  ;;  %p806_p8 = por %p805_p7, %p804_p5 }
  0x40   : > { %649 = vmatprep.subr.mxu0 %v338_v7  ;;  %688 = vmatprep.subr.mxu1 %v338_v7 }
  0x41   : > { %650 = vmatpush3.msra.mxu0 %v338_v7  ;;  %704 = vmatpush3.msra.mxu1 %v338_v7  ;;  %p807_p9 = pnand %p806_p8, %p800_p4 }
  0x42   : > { %651 = vmatprep.subr.mxu0 %v337_v9  ;;  %689 = vmatprep.subr.mxu1 %v337_v9 }
  0x43   : > { %652 = vmatpush3.msra.mxu0 %v337_v9  ;;  %705 = vmatpush3.msra.mxu1 %v337_v9 }
  0x44   : > { %653 = vmatprep.subr.mxu0 %v336_v10  ;;  %690 = vmatprep.subr.mxu1 %v336_v10 }
  0x45   : > { %654 = vmatpush3.msra.mxu0 %v336_v10  ;;  %706 = vmatpush3.msra.mxu1 %v336_v10 }
  0x46   : > { %655 = vmatprep.subr.mxu0 %v335_v12  ;;  %691 = vmatprep.subr.mxu1 %v335_v12  ;;  %v768_v16 = vpop.eup %767 }
  0x47   : > { %656 = vmatpush3.msra.mxu0 %v335_v12  ;;  %707 = vmatpush3.msra.mxu1 %v335_v12  ;;  %v275_v17 = vrot.slane %v768_v16, %v274_v14 }
  0x48   : > { %657 = vmatprep.subr.mxu0 %v334_v13  ;;  %692 = vmatprep.subr.mxu1 %v334_v13 }
  0x49   : > { %658 = vmatpush3.msra.mxu0 %v334_v13  ;;  %708 = vmatpush3.msra.mxu1 %v334_v13  ;;  %v277_v25 = vmul.f32 %v275_v17, %v259_v21  ;;  %v281_v26 = vmul.f32 %v275_v17, %v263_v23  ;;  %v278_v27 = vmul.f32 %v275_v17, %v260_v24 }
  0x4a   : > { %659 = vmatprep.subr.mxu0 %v333_v15  ;;  %693 = vmatprep.subr.mxu1 %v333_v15  ;;  %v282_v31 = vmul.f32 %v275_v17, %v264_v28  ;;  %v279_v32 = vmul.f32 %v275_v17, %v261_v29  ;;  %v283_v33 = vmul.f32 %v275_v17, %v265_v30 }
  0x4b   : > { %660 = vmatpush3.msra.mxu0 %v333_v15  ;;  %709 = vmatpush3.msra.mxu1 %v333_v15  ;;  %v291_v35 = vadd.f32 %v607_v22, %v277_v25  ;;  %v295_v36 = vadd.f32 %v607_v22, %v281_v26  ;;  %v292_v37 = vadd.f32 %v607_v22, %v278_v27 }
  0x4c   : > { %309 = vadd.xlane.f32.xlu0 %v308_v18  ;;  %661 = vmatprep.subr.mxu0 %v332_v19  ;;  %v296_v38 = vadd.f32 %v607_v22, %v282_v31  ;;  %v293_v39 = vadd.f32 %v607_v22, %v279_v32  ;;  %v297_v40 = vadd.f32 %v607_v22, %v283_v33 }
  0x4d   : > { %694 = vmatprep.subr.mxu1 %v332_v19  ;;  %662 = vmatpush3.msra.mxu0 %v332_v19  ;;  %299 = vst [vmem:[%s1068_s10] sm:$0xff] %v291_v35  ;;  %303 = vst [vmem:[%s1068_s10 + $0x20] sm:$0xff] %v295_v36  ;;  %v280_v44 = vmul.f32 %v275_v17, %v262_v41  ;;  %v284_v45 = vmul.f32 %v275_v17, %v266_v42 }
  0x4e   : > { %710 = vmatpush3.msra.mxu1 %v332_v19  ;;  %663 = vmatprep.subr.mxu0 %v331_v20  ;;  %300 = vst [vmem:[%s1068_s10 + $0x8] sm:$0xff] %v292_v37  ;;  %304 = vst [vmem:[%s1068_s10 + $0x28] sm:$0xff] %v296_v38 }
  0x4f   : > { %695 = vmatprep.subr.mxu1 %v331_v20  ;;  %664 = vmatpush3.msra.mxu0 %v331_v20  ;;  %301 = vst [vmem:[%s1068_s10 + $0x10] sm:$0xff] %v293_v39  ;;  %305 = vst [vmem:[%s1068_s10 + $0x30] sm:$0xff] %v297_v40  ;;  %v294_v47 = vadd.f32 %v607_v22, %v280_v44  ;;  %v298_v48 = vadd.f32 %v607_v22, %v284_v45 }
  0x50   : > { %711 = vmatpush3.msra.mxu1 %v331_v20  ;;  %665 = vmatprep.subr.mxu0 %v330_v34 }
  0x51   : > { %696 = vmatprep.subr.mxu1 %v330_v34  ;;  %666 = vmatpush3.msra.mxu0 %v330_v34  ;;  %302 = vst [vmem:[%s1068_s10 + $0x18] sm:$0xff] %v294_v47  ;;  %306 = vst [vmem:[%s1068_s10 + $0x38] sm:$0xff] %v298_v48 }
  0x52   : > { %712 = vmatpush3.msra.mxu1 %v330_v34  ;;  %667 = vmatprep.subr.mxu0 %v329_v43 }
  0x53   : > { %697 = vmatprep.subr.mxu1 %v329_v43  ;;  %668 = vmatpush3.msra.mxu0 %v329_v43 }
  0x54   : > { %713 = vmatpush3.msra.mxu1 %v329_v43  ;;  %669 = vmatprep.subr.mxu0 %v328_v46 }
  0x55   : > { %698 = vmatprep.subr.mxu1 %v328_v46  ;;  %670 = vmatpush3.msra.mxu0 %v328_v46 }
  0x56   : > { %714 = vmatpush3.msra.mxu1 %v328_v46  ;;  %671 = vmatprep.mubr.f32.mxu0 %v320_v49 }
  0x57   : > { %677 = vmatprep.mubr.f32.mxu1 %v324_v50  ;;  %672 = vmatmul.mubr.f32.vlgmr.msra.gmra.mxu0 %v321_v51 }
  0x58   : > { %678 = vmatmul.mubr.f32.vlgmr.msra.gmra.mxu1 %v325_v52  ;;  %674 = vmatprep.mubr.f32.mxu0 %v322_v53 }
  0x59   : > { %680 = vmatprep.mubr.f32.mxu1 %v326_v54 }
  0x5b   : > { %675 = vmatmul.mubr.f32.gmra.mxu0 %v323_v55 }
  0x5c   : > { %681 = vmatmul.mubr.f32.gmra.mxu1 %v327_v56 }
  0x5d   : > { %810 = shalt.err (!%p807_p9)
}
  0x5e   : > { %s811_s29 = scalar_lea.hbm %s1086_s12, 1024  ;;  %s815_s25 = scalar_lea.hbm %s1146_s4, 4096 }
  0x5f   : > { %p812_p13 = scmp.ne.s32.totalorder %s1086_s12, %s811_s29  ;;  %p816_p2 = scmp.lt.s32.totalorder %s1086_s12, %s1146_s4 }
  0x60   : > { %p817_p3 = scmp.lt.s32.totalorder %s815_s25, %s811_s29 }
  0x61   : > { %p813_p1 = pnand %p812_p13, %p1156_p11 }
  0x62   : > { %p818_p6 = por %p817_p3, %p816_p2 }
  0x63   : > { %p814_p0 = pneg %p813_p1 }
  0x65   : > { %p819_p10 = pnand %p818_p6, %p814_p0 }
  0x67   : > { %822 = shalt.err (!%p819_p10)
}
  0x68   : > { %s867_s17 = smov 128   ;;  %s868_s26 = smov 8   ;;  %vm466_vm1 = vcmask 31744  }
  0x69   : > { %719 = dma.vmem_to_hbm [thread:$0]  (%p1156_p11), %s1088_s13, 1024, %s1086_s12, %s476_s14, %s867_s17, %s867_s17, %s868_s26  }
  0x6a   : > { %s605_s15 = sshll.u32 %s920_s22, 3 }
  0x6b   : > { %p254_p12 = scmp.lt.s32.totalorder %s605_s15, 31 }
  0x6d   : > { %s1163_s15 = smov (!%p254_p12, %s605_s15), 31 }
  0x6e   : > { %s606_s29 = sshll.u32 %s1163_s15, 3 }
  0x6f   : > { %s257_s13 = scalar_lea.vmem %s1147_s5, %s606_s29 }
  0xd5   : > { %v310_v57 = vpop.xlane.xlu0 %309 }
  0xd6   : > { %v311_v58 = vrot.slane %v310_v57, 4 }
  0xd8   : > { %v312_v59 = vadd.f32 %v311_v58, %v310_v57 }
  0xda   : > { %v313_v60 = vrot.slane %v312_v59, 2 }
  0xdc   : > { %v314_v61 = vadd.f32 %v313_v60, %v312_v59 }
  0xde   : > { %v315_v62 = vrot.slane %v314_v61, 1 }
  0xe0   : > { %v316_v63 = vadd.f32 %v315_v62, %v314_v61 }
  0xe2   : > { %715 = vpush %v316_v63 }
 0x113   : > { %s716_s16 = spop %715 }
 0x114   : > { %s318_s8 = smul.f32 0.25, %s716_s16 }
 0x116   : > { %s319_s7 = ssub.f32 -29.406033, %s318_s8 }
 0x117   : > { %v673_v0 = vpop.f32.mrf.mxu0 }
 0x118   : > { %v457_v1 = vstv %s319_s7  ;;  %v450_v2 = vmul.f32 0.5, %v673_v0  ;;  %v679_v3 = vpop.f32.mrf.mxu1 }
 0x119   : > { %v454_v4 = vmul.f32 0.5, %v679_v3  ;;  %v410_v5 = vpop.f32.mrf.mxu0 }
 0x11a   : > { %v459_v6 = vsub.f32 %v457_v1, %v450_v2  ;;  %v449_v7 = vmul.f32 0.5, %v410_v5  ;;  %v430_v8 = vpop.f32.mrf.mxu1 }
 0x11b   : > { %v463_v9 = vsub.f32 %v457_v1, %v454_v4  ;;  %v453_v10 = vmul.f32 0.5, %v430_v8  ;;  %v676_v11 = vpop.f32.mrf.mxu0 }
 0x11c   : > { %468 = vst.msk [vmem:[%s257_s13 + $0x8] sm:$0xff] %vm466_vm1, %v459_v6  ;;  %v458_v12 = vsub.f32 %v457_v1, %v449_v7  ;;  %v452_v13 = vmul.f32 0.5, %v676_v11  ;;  %v682_v14 = vpop.f32.mrf.mxu1 }
 0x11d   : > { %472 = vst.msk [vmem:[%s257_s13 + $0x28] sm:$0xff] %vm466_vm1, %v463_v9  ;;  %v462_v15 = vsub.f32 %v457_v1, %v453_v10  ;;  %v456_v16 = vmul.f32 0.5, %v682_v14  ;;  %v420_v17 = vpop.f32.mrf.mxu0 }
 0x11e   : > { %467 = vst.msk [vmem:[%s257_s13] sm:$0xff] %vm466_vm1, %v458_v12  ;;  %v461_v18 = vsub.f32 %v457_v1, %v452_v13  ;;  %v451_v19 = vmul.f32 0.5, %v420_v17  ;;  %v440_v20 = vpop.f32.mrf.mxu1 }
 0x11f   : > { %471 = vst.msk [vmem:[%s257_s13 + $0x20] sm:$0xff] %vm466_vm1, %v462_v15  ;;  %v465_v21 = vsub.f32 %v457_v1, %v456_v16  ;;  %v455_v22 = vmul.f32 0.5, %v440_v20 }
 0x120   : > { %470 = vst.msk [vmem:[%s257_s13 + $0x18] sm:$0xff] %vm466_vm1, %v461_v18  ;;  %v460_v23 = vsub.f32 %v457_v1, %v451_v19 }
 0x121   : > { %474 = vst.msk [vmem:[%s257_s13 + $0x38] sm:$0xff] %vm466_vm1, %v465_v21  ;;  %v464_v24 = vsub.f32 %v457_v1, %v455_v22 }
 0x122   : > { %469 = vst.msk [vmem:[%s257_s13 + $0x10] sm:$0xff] %vm466_vm1, %v460_v23 }
 0x123   : > { %473 = vst.msk [vmem:[%s257_s13 + $0x30] sm:$0xff] %vm466_vm1, %v464_v24 }
 0x124 PF: > { %p730_p11 = scmp.ge.s32.totalorder %s861_s21, 2  ;;  %s513_s22 = sand.u32 1, %s849_s18  }
 0x125   : > { %p1157_p4 = scmp.ne.s32.totalorder %s1153_s6, 0  ;;  %s514_s12 = scalar_lea.sflag [#allocation4], %s513_s22 }
 0x127   : > { %p726_p5 = pnand %p730_p11, %p1157_p4 }
 0x129   : > { %p727_p7 = pneg %p726_p5 }
 0x12b   : > { %844 = dma.done.wait (%p727_p7), %s514_s12, 1024  }
 0x12c   : > { %846 = vsyncadd (%p727_p7), %s514_s12, 4294966272  ;;  %p19_p8 = scmp.ge.s32.totalorder %s924_s24, 6   ;;  %s1158_s18 = smov %s853_s19 }
 0x12d   : > { %s1159_s19 = smov %s857_s20  ;;  %s1160_s20 = smov %s936_s27 }
 0x12e   : > { %s1161_s21 = smov %s924_s24  ;;  %21 = sbr.rel (!%p19_p8) target bundleno = 5 (0x5), region = 93 }
 0x133   :  { %527 = vsyncpa [#allocation3], 1 }
 0x134   :  { %529 = vsyncpa [#allocation3 + $0x1], 1 }
 0x135   :  { %530 = vsyncpa [#allocation4], 1 }
 0x136   :  { %532 = vsyncpa [#allocation4 + $0x1], 1 }

</bundles_post_ra>
